<compile_context>
chip_gen: v6e
topology: v6e:2x2x1
jax: 0.10.0
libtpu: 0.0.40
codegen_flags: <defaults>
</compile_context>

<pallas_src>
import jax
import jax.numpy as jnp
from jax import lax
from jax.experimental import pallas as pl
from jax.experimental.pallas import tpu as pltpu

_BN_EPS = 1e-5
_LANE = 128


def _round_up(n, m):
    return (n + m - 1) // m * m


def _device_kind():
    try:
        return jax.devices()[0].device_kind.lower()
    except Exception:
        return ""


def _is_v7x():
    return "v7" in _device_kind()


def _default_tile_cap():
    # v7x: 64 MiB physical VMEM (vs 128 MiB on v5e/v6e) -> cap the hidden tile
    # lower so the weight tiles + (B, tile) transients stay within budget.
    return 512 if _is_v7x() else 1024


def _pick_tile_hidden(hidden_p, cap):
    """Largest multiple of 128 that divides hidden_p and is <= cap."""
    best = _LANE
    t = _LANE
    while t <= min(hidden_p, cap):
        if hidden_p % t == 0:
            best = t
        t += _LANE
    return best


def mlp_head_kernel(x_ref, w1t_ref, gamma_ref, beta_ref, w2t_ref, o_ref,
                    acc_ref):
    """One hidden-tile step: linear1 -> folded BN -> ReLU -> linear2 partial.

    Grid = (hidden-split, hidden-tiles-within-split).  The split axis is
    "parallel" (each split writes its own f32 partial-output slice, summed in
    the wrapper -> uses both TCs on v7x); the within-split axis is an
    "arbitrary" reduction with an f32 VMEM accumulator.
    """
    k = pl.program_id(1)

    @pl.when(k == 0)
    def _():
        acc_ref[...] = jnp.zeros_like(acc_ref)

    # Linear 1 on this hidden tile.  x is cast to the MXU compute dtype here
    # (not in the wrapper), so x travels HBM->VMEM once in its native dtype.
    # The Linear1 bias is intentionally absent: training-mode BatchNorm cancels
    # it exactly (variance is shift-invariant).
    x = x_ref[...].astype(w1t_ref.dtype)
    h = jnp.dot(x, w1t_ref[0], preferred_element_type=jnp.float32)

    # BatchNorm1d (training mode, biased variance): one-pass stats folded into
    # a single per-feature scale/shift -> only 2 VPU passes over (B, tile).
    inv_b = 1.0 / h.shape[0]
    mean = jnp.sum(h, axis=0, keepdims=True) * inv_b               # (1, TH)
    ex2 = jnp.sum(h * h, axis=0, keepdims=True) * inv_b            # (1, TH)
    var = jnp.maximum(ex2 - mean * mean, 0.0)
    scale = gamma_ref[...] * lax.rsqrt(var + _BN_EPS)              # EUP rsqrt
    shift = beta_ref[...] - mean * scale

    # BN affine + ReLU fused.
    hr = jnp.maximum(h * scale + shift, 0.0)

    # Linear 2 partial product for this hidden tile, accumulated in f32 VMEM.
    acc_ref[...] += jnp.dot(hr.astype(w2t_ref.dtype), w2t_ref[...],
                            preferred_element_type=jnp.float32)

    @pl.when(k == pl.num_programs(1) - 1)
    def _():
        o_ref[0] = acc_ref[...]


def prepare_mlp_head_params(w1, b1, gamma, beta, w2, b2,
                            compute_dtype=jnp.bfloat16, tile_hidden=None):
    """One-time parameter prep: transpose, lane-pad, pre-block w1, cast.

    w1: (hidden, in_dim), w2: (out_dim, hidden)  (PyTorch layout).
    b1 is dropped: it is mathematically cancelled by training-mode BatchNorm1d.
    w1^T is pre-blocked into contiguous (n_k, in_dim, tile_hidden) tiles so
    each grid step's weight DMA is one contiguous copy (matters most on v5e).
    Padding is exact: padded hidden columns carry gamma=beta=0 and zero w2
    rows, so they stay zero through BN/ReLU/linear2; padded out columns are
    sliced off after the call.
    """
    del b1
    hidden, in_dim = w1.shape
    out_dim = w2.shape[0]
    if tile_hidden is None:
        tile_hidden = _pick_tile_hidden(_round_up(hidden, _LANE),
                                        _default_tile_cap())
    assert tile_hidden % _LANE == 0
    hidden_p = _round_up(hidden, tile_hidden)
    n_k = hidden_p // tile_hidden
    out_p = _round_up(out_dim, _LANE)

    w1t = jnp.zeros((in_dim, hidden_p), jnp.float32)
    w1t = w1t.at[:, :hidden].set(jnp.transpose(w1).astype(jnp.float32))
    w1t = (w1t.reshape(in_dim, n_k, tile_hidden)
           .transpose(1, 0, 2).astype(compute_dtype))       # (n_k, in, tile)

    gamma_p = jnp.zeros((1, hidden_p), jnp.float32).at[:, :hidden].set(
        gamma.astype(jnp.float32))
    beta_p = jnp.zeros((1, hidden_p), jnp.float32).at[:, :hidden].set(
        beta.astype(jnp.float32))

    w2t = jnp.zeros((hidden_p, out_p), compute_dtype)
    w2t = w2t.at[:hidden, :out_dim].set(jnp.transpose(w2).astype(compute_dtype))

    b2_p = jnp.zeros((1, out_p), jnp.float32).at[:, :out_dim].set(
        b2.astype(jnp.float32))

    return dict(w1t=w1t, gamma=gamma_p, beta=beta_p, w2t=w2t, b2=b2_p,
                out_dim=out_dim)


def mlp_head_apply(x, params, num_k_splits=None):
    """Per-call path: tiled kernel over hidden, wrapper sums split partials."""
    w1t, gamma, beta, w2t, b2 = (params["w1t"], params["gamma"], params["beta"],
                                 params["w2t"], params["b2"])
    out_dim = params["out_dim"]
    n_k, in_dim_w, tile_hidden = w1t.shape
    hidden_p, out_p = w2t.shape
    B, in_dim = x.shape
    assert in_dim == in_dim_w, (in_dim, in_dim_w)

    # v7x has 2 TensorCores: split the hidden-tile axis across a "parallel"
    # leading grid axis; each core reduces its own tiles into its own partial.
    # (BN stats are per hidden tile, so no two-pass stats redesign is needed.)
    if num_k_splits is None:
        num_k_splits = 2 if (_is_v7x() and n_k % 2 == 0) else 1
    if n_k % num_k_splits != 0:
        num_k_splits = 1
    n_kps = n_k // num_k_splits

    comp = jnp.dtype(w1t.dtype).itemsize
    xi = jnp.dtype(x.dtype).itemsize
    # VMEM working set: x (single buffer), double-buffered weight tiles,
    # acc + output blocks, (B, tile_hidden) h/hr transients.
    needed = (B * in_dim * xi
              + 2 * in_dim * tile_hidden * comp          # w1t tiles
              + 2 * 2 * tile_hidden * 4                  # gamma/beta tiles
              + 2 * tile_hidden * out_p * comp           # w2t tiles
              + B * out_p * 4                            # accumulator
              + 2 * B * out_p * 4                        # output block
              + B * tile_hidden * (4 + comp))            # h (f32) + hr
    ceiling = (56 if _is_v7x() else 100) * 1024 * 1024
    vmem_limit = int(min(ceiling, max(2 * needed, 32 * 1024 * 1024)))

    cost = pl.CostEstimate(
        flops=2 * B * in_dim * hidden_p + 2 * B * hidden_p * out_p
              + 8 * B * hidden_p,
        transcendentals=hidden_p,
        bytes_accessed=(x.size * xi + w1t.size * comp + w2t.size * comp
                        + gamma.size * 4 + beta.size * 4
                        + num_k_splits * B * out_p * 4),
    )

    def _run(single_buffer_x):
        # x's index map is grid-constant (per core), so its second pipeline
        # buffer is pure VMEM waste -> request a single buffer.
        if single_buffer_x:
            x_spec = pl.BlockSpec((B, in_dim), lambda s, k: (0, 0),
                                  pipeline_mode=pl.Buffered(1))
        else:
            x_spec = pl.BlockSpec((B, in_dim), lambda s, k: (0, 0))
        grid_spec = pltpu.PrefetchScalarGridSpec(
            num_scalar_prefetch=0,
            grid=(num_k_splits, n_kps),
            in_specs=[
                x_spec,                                                    # x
                pl.BlockSpec((1, in_dim, tile_hidden),
                             lambda s, k: (s * n_kps + k, 0, 0)),          # w1t
                pl.BlockSpec((1, tile_hidden),
                             lambda s, k: (0, s * n_kps + k)),             # gamma
                pl.BlockSpec((1, tile_hidden),
                             lambda s, k: (0, s * n_kps + k)),             # beta
                pl.BlockSpec((tile_hidden, out_p),
                             lambda s, k: (s * n_kps + k, 0)),             # w2t
            ],
            out_specs=pl.BlockSpec((1, B, out_p), lambda s, k: (s, 0, 0)),
            scratch_shapes=[pltpu.VMEM((B, out_p), jnp.float32)],
        )
        return pl.pallas_call(
            mlp_head_kernel,
            out_shape=jax.ShapeDtypeStruct((num_k_splits, B, out_p),
                                           jnp.float32),
            grid_spec=grid_spec,
            compiler_params=pltpu.CompilerParams(
                dimension_semantics=("parallel", "arbitrary"),
                vmem_limit_bytes=vmem_limit),
            cost_estimate=cost,
        )(x, w1t, gamma, beta, w2t)

    try:
        parts = _run(True)
    except Exception:
        # Fallback for jax builds where BlockSpec pipeline_mode / Buffered(1)
        # is unavailable; identical kernel with default double buffering.
        parts = _run(False)

    # Tiny epilogue on (B, out_p): sum split partials, add bias, un-pad, cast.
    out = jnp.sum(parts, axis=0) + b2
    return out[:, :out_dim].astype(x.dtype)


def mlp_head(x, w1, b1, gamma, beta, w2, b2, compute_dtype=jnp.bfloat16,
             tile_hidden=None, num_k_splits=None):
    """Convenience drop-in matching the PyTorch module's parameter layout."""
    params = prepare_mlp_head_params(w1, b1, gamma, beta, w2, b2,
                                     compute_dtype=compute_dtype,
                                     tile_hidden=tile_hidden)
    return mlp_head_apply(x, params, num_k_splits=num_k_splits)


def mlp_head_ref(x, w1, b1, gamma, beta, w2, b2):
    """Pure-JAX f32 reference with exact PyTorch training-mode semantics."""
    h = x @ w1.T + b1
    mean = jnp.mean(h, axis=0, keepdims=True)
    var = jnp.mean((h - mean) ** 2, axis=0, keepdims=True)
    hn = (h - mean) / jnp.sqrt(var + _BN_EPS) * gamma + beta
    hr = jnp.maximum(hn, 0.0)
    return hr @ w2.T + b2


def _make_params(key, in_dim, hidden_dim, out_dim):
    k1, kb1, k2, kb2 = jax.random.split(key, 4)
    s1 = 1.0 / jnp.sqrt(in_dim)
    s2 = 1.0 / jnp.sqrt(hidden_dim)
    w1 = jax.random.uniform(k1, (hidden_dim, in_dim), jnp.float32, -s1, s1)
    b1 = jax.random.uniform(kb1, (hidden_dim,), jnp.float32, -s1, s1)
    gamma = jnp.ones((hidden_dim,), jnp.float32)
    beta = jnp.zeros((hidden_dim,), jnp.float32)
    w2 = jax.random.uniform(k2, (out_dim, hidden_dim), jnp.float32, -s2, s2)
    b2 = jax.random.uniform(kb2, (out_dim,), jnp.float32, -s2, s2)
    return w1, b1, gamma, beta, w2, b2


if __name__ == "__main__":
    key = jax.random.PRNGKey(0)
    kx1, kp1, kx2, kp2 = jax.random.split(key, 4)

    # Config A: f32 compute path, hidden/out below a lane (exercises padding),
    # single hidden tile, no split.  Tight tolerance (also proves dropping b1
    # is exact).
    B, in_dim, hidden_dim, out_dim = 8, 32, 64, 16
    x = jax.random.normal(kx1, (B, in_dim), dtype=jnp.float32)
    p = _make_params(kp1, in_dim, hidden_dim, out_dim)
    out = jax.block_until_ready(mlp_head(x, *p, compute_dtype=jnp.float32))
    ref = mlp_head_ref(x, *p)
    assert out.shape == (B, out_dim)
    assert jnp.allclose(out, ref, atol=1e-3, rtol=1e-3), float(
        jnp.max(jnp.abs(out - ref)))

    # Config B: bf16 MXU path, 4 hidden tiles split 2-ways (exercises the
    # parallel split axis + the per-split accumulation loop), out_dim padded
    # 24 -> 128.  Looser tolerance: BN stats from bf16-operand matmuls.
    B, in_dim, hidden_dim, out_dim = 16, 48, 512, 24
    x = jax.random.normal(kx2, (B, in_dim), dtype=jnp.float32)
    p = _make_params(kp2, in_dim, hidden_dim, out_dim)
    out = jax.block_until_ready(
        mlp_head(x, *p, compute_dtype=jnp.bfloat16, tile_hidden=128,
                 num_k_splits=2))
    ref = mlp_head_ref(x, *p)
    assert out.shape == (B, out_dim)
    assert jnp.allclose(out, ref, atol=5e-2, rtol=5e-2), float(
        jnp.max(jnp.abs(out - ref)))

    print("KERNEL_OK")
</pallas_src>

<mosaic_0001>
module attributes {stable_mosaic.version = 11 : i64} {
  func.func @mlp_head_kernel(%arg0: i32, %arg1: i32, %arg2: memref<8x32xf32, #tpu.memory_space<vmem>>, %arg3: memref<1x32x128xf32, #tpu.memory_space<vmem>>, %arg4: memref<1x128xf32, #tpu.memory_space<vmem>>, %arg5: memref<1x128xf32, #tpu.memory_space<vmem>>, %arg6: memref<128x128xf32, #tpu.memory_space<vmem>>, %arg7: memref<1x8x128xf32, #tpu.memory_space<vmem>>, %arg8: memref<8x128xf32, #tpu.memory_space<vmem>>) attributes {dimension_semantics = [#tpu.dimension_semantics<parallel>, #tpu.dimension_semantics<arbitrary>], iteration_bounds = array<i64: 1, 1>, scalar_prefetch = 0 : i64, scratch_operands = 1 : i64, tpu.core_type = #tpu.core_type<tc>, window_params = [{pipeline_mode = #tpu.pipeline_mode<synchronous>, transform_indices = @transform_0, window_bounds = array<i64: 8, 32>}, {transform_indices = @transform_1, window_bounds = array<i64: 1, 32, 128>}, {transform_indices = @transform_2, window_bounds = array<i64: 1, 128>}, {transform_indices = @transform_3, window_bounds = array<i64: 1, 128>}, {transform_indices = @transform_4, window_bounds = array<i64: 128, 128>}, {transform_indices = @transform_5, window_bounds = array<i64: 1, 8, 128>}]} {
    %c0_i32 = arith.constant 0 : i32
    %0 = arith.cmpi eq, %arg1, %c0_i32 : i32
    %1 = arith.extui %0 : i1 to i32
    %c0_i32_0 = arith.constant 0 : i32
    %2 = arith.cmpi ne, %1, %c0_i32_0 : i32
    scf.if %2 {
      %cst_25 = arith.constant 0.000000e+00 : f32
      %42 = vector.broadcast %cst_25 : f32 to vector<8x128xf32>
      %c0_26 = arith.constant 0 : index
      %c0_27 = arith.constant 0 : index
      %43 = vector.load %arg8[%c0_26, %c0_27] : memref<8x128xf32, #tpu.memory_space<vmem>>, vector<8x128xf32>
      tpu.vector_store %arg8[%c0_26, %c0_27], %42 {strides = array<i32>} : memref<8x128xf32, #tpu.memory_space<vmem>>, vector<8x128xf32>,
    } else {
    }
    %c0 = arith.constant 0 : index
    %c0_1 = arith.constant 0 : index
    %3 = vector.load %arg2[%c0, %c0_1] : memref<8x32xf32, #tpu.memory_space<vmem>>, vector<8x32xf32>
    %c0_2 = arith.constant 0 : index
    %c0_3 = arith.constant 0 : index
    %c0_4 = arith.constant 0 : index
    %4 = vector.load %arg3[%c0_2, %c0_3, %c0_4] : memref<1x32x128xf32, #tpu.memory_space<vmem>>, vector<1x32x128xf32>
    %5 = vector.shape_cast %4 : vector<1x32x128xf32> to vector<32x128xf32>
    %cst = arith.constant dense<0.000000e+00> : vector<8x128xf32>
    %6 = tpu.matmul %3, %5, %cst {dimension_numbers = #tpu.dot_dimension_numbers<[1], [0], [0], [1], [0, 0, 1, 1], [], []>} : vector<8x32xf32>, vector<32x128xf32>, vector<8x128xf32> -> vector<8x128xf32>
    %cst_5 = arith.constant dense<0.000000e+00> : vector<128xf32>
    %7 = vector.multi_reduction <add>, %6, %cst_5 [0] : vector<8x128xf32> to vector<128xf32>
    %8 = vector.shape_cast %7 : vector<128xf32> to vector<1x128xf32>
    %cst_6 = arith.constant 1.250000e-01 : f32
    %9 = vector.broadcast %cst_6 : f32 to vector<1x128xf32>
    %10 = arith.mulf %8, %9 : vector<1x128xf32>
    %11 = arith.mulf %6, %6 : vector<8x128xf32>
    %cst_7 = arith.constant dense<0.000000e+00> : vector<128xf32>
    %12 = vector.multi_reduction <add>, %11, %cst_7 [0] : vector<8x128xf32> to vector<128xf32>
    %13 = vector.shape_cast %12 : vector<128xf32> to vector<1x128xf32>
    %cst_8 = arith.constant 1.250000e-01 : f32
    %14 = vector.broadcast %cst_8 : f32 to vector<1x128xf32>
    %15 = arith.mulf %13, %14 : vector<1x128xf32>
    %16 = arith.mulf %10, %10 : vector<1x128xf32>
    %17 = arith.subf %15, %16 : vector<1x128xf32>
    %cst_9 = arith.constant 0.000000e+00 : f32
    %18 = vector.broadcast %cst_9 : f32 to vector<1x128xf32>
    %19 = arith.maximumf %17, %18 : vector<1x128xf32>
    %c0_10 = arith.constant 0 : index
    %c0_11 = arith.constant 0 : index
    %20 = vector.load %arg4[%c0_10, %c0_11] : memref<1x128xf32, #tpu.memory_space<vmem>>, vector<1x128xf32>
    %cst_12 = arith.constant 9.99999974E-6 : f32
    %21 = vector.broadcast %cst_12 : f32 to vector<1x128xf32>
    %22 = arith.addf %19, %21 : vector<1x128xf32>
    %23 = math.rsqrt %22 : vector<1x128xf32>
    %24 = arith.mulf %20, %23 : vector<1x128xf32>
    %c0_13 = arith.constant 0 : index
    %c0_14 = arith.constant 0 : index
    %25 = vector.load %arg5[%c0_13, %c0_14] : memref<1x128xf32, #tpu.memory_space<vmem>>, vector<1x128xf32>
    %26 = arith.mulf %10, %24 : vector<1x128xf32>
    %27 = arith.subf %25, %26 : vector<1x128xf32>
    %28 = vector.broadcast %24 : vector<1x128xf32> to vector<8x128xf32>
    %29 = arith.mulf %6, %28 : vector<8x128xf32>
    %30 = vector.broadcast %27 : vector<1x128xf32> to vector<8x128xf32>
    %31 = arith.addf %29, %30 : vector<8x128xf32>
    %cst_15 = arith.constant 0.000000e+00 : f32
    %32 = vector.broadcast %cst_15 : f32 to vector<8x128xf32>
    %33 = arith.maximumf %31, %32 : vector<8x128xf32>
    %c0_16 = arith.constant 0 : index
    %c0_17 = arith.constant 0 : index
    %34 = vector.load %arg8[%c0_16, %c0_17] : memref<8x128xf32, #tpu.memory_space<vmem>>, vector<8x128xf32>
    %c0_18 = arith.constant 0 : index
    %c0_19 = arith.constant 0 : index
    %35 = vector.load %arg6[%c0_18, %c0_19] : memref<128x128xf32, #tpu.memory_space<vmem>>, vector<128x128xf32>
    %cst_20 = arith.constant dense<0.000000e+00> : vector<8x128xf32>
    %36 = tpu.matmul %33, %35, %cst_20 {dimension_numbers = #tpu.dot_dimension_numbers<[1], [0], [0], [1], [0, 0, 1, 1], [], []>} : vector<8x128xf32>, vector<128x128xf32>, vector<8x128xf32> -> vector<8x128xf32>
    %37 = arith.addf %34, %36 : vector<8x128xf32>
    %c0_21 = arith.constant 0 : index
    %c0_22 = arith.constant 0 : index
    %38 = vector.load %arg8[%c0_21, %c0_22] : memref<8x128xf32, #tpu.memory_space<vmem>>, vector<8x128xf32>
    tpu.vector_store %arg8[%c0_21, %c0_22], %37 {strides = array<i32>} : memref<8x128xf32, #tpu.memory_space<vmem>>, vector<8x128xf32>,
    %c0_i32_23 = arith.constant 0 : i32
    %39 = arith.cmpi eq, %arg1, %c0_i32_23 : i32
    %40 = arith.extui %39 : i1 to i32
    %c0_i32_24 = arith.constant 0 : i32
    %41 = arith.cmpi ne, %40, %c0_i32_24 : i32
    scf.if %41 {
      %c0_25 = arith.constant 0 : index
      %c0_26 = arith.constant 0 : index
      %42 = vector.load %arg8[%c0_25, %c0_26] : memref<8x128xf32, #tpu.memory_space<vmem>>, vector<8x128xf32>
      %c0_27 = arith.constant 0 : index
      %c0_28 = arith.constant 0 : index
      %c0_29 = arith.constant 0 : index
      %43 = vector.load %arg7[%c0_27, %c0_28, %c0_29] : memref<1x8x128xf32, #tpu.memory_space<vmem>>, vector<1x8x128xf32>
      %44 = vector.shape_cast %43 : vector<1x8x128xf32> to vector<8x128xf32>
      %45 = vector.shape_cast %42 : vector<8x128xf32> to vector<1x8x128xf32>
      tpu.vector_store %arg7[%c0_27, %c0_28, %c0_29], %45 {strides = array<i32>} : memref<1x8x128xf32, #tpu.memory_space<vmem>>, vector<1x8x128xf32>,
    } else {
    }
    return
  }
  func.func @transform_0(%arg0: i32, %arg1: i32) -> (i32, i32) {
    %c0_i32 = arith.constant 0 : i32
    %c0_i32_0 = arith.constant 0 : i32
    %c0_i32_1 = arith.constant 0 : i32
    return %c0_i32, %c0_i32_0 : i32, i32
  }
  func.func @transform_1(%arg0: i32, %arg1: i32) -> (i32, i32, i32) {
    %c1_i32 = arith.constant 1 : i32
    %0 = arith.muli %arg0, %c1_i32 : i32
    %1 = arith.addi %0, %arg1 : i32
    %c0_i32 = arith.constant 0 : i32
    %c0_i32_0 = arith.constant 0 : i32
    %c0_i32_1 = arith.constant 0 : i32
    return %1, %c0_i32, %c0_i32_0 : i32, i32, i32
  }
  func.func @transform_2(%arg0: i32, %arg1: i32) -> (i32, i32) {
    %c1_i32 = arith.constant 1 : i32
    %0 = arith.muli %arg0, %c1_i32 : i32
    %1 = arith.addi %0, %arg1 : i32
    %c0_i32 = arith.constant 0 : i32
    %c0_i32_0 = arith.constant 0 : i32
    return %c0_i32, %1 : i32, i32
  }
  func.func @transform_3(%arg0: i32, %arg1: i32) -> (i32, i32) {
    %c1_i32 = arith.constant 1 : i32
    %0 = arith.muli %arg0, %c1_i32 : i32
    %1 = arith.addi %0, %arg1 : i32
    %c0_i32 = arith.constant 0 : i32
    %c0_i32_0 = arith.constant 0 : i32
    return %c0_i32, %1 : i32, i32
  }
  func.func @transform_4(%arg0: i32, %arg1: i32) -> (i32, i32) {
    %c1_i32 = arith.constant 1 : i32
    %0 = arith.muli %arg0, %c1_i32 : i32
    %1 = arith.addi %0, %arg1 : i32
    %c0_i32 = arith.constant 0 : i32
    %c0_i32_0 = arith.constant 0 : i32
    return %1, %c0_i32 : i32, i32
  }
  func.func @transform_5(%arg0: i32, %arg1: i32) -> (i32, i32, i32) {
    %c0_i32 = arith.constant 0 : i32
    %c0_i32_0 = arith.constant 0 : i32
    %c0_i32_1 = arith.constant 0 : i32
    return %arg0, %c0_i32, %c0_i32_0 : i32, i32, i32
  }
}

module attributes {stable_mosaic.version = 11 : i64} {
  func.func @mlp_head_kernel(%arg0: i32, %arg1: i32, %arg2: memref<8x32xf32, #tpu.memory_space<vmem>>, %arg3: memref<1x32x128xf32, #tpu.memory_space<vmem>>, %arg4: memref<1x128xf32, #tpu.memory_space<vmem>>, %arg5: memref<1x128xf32, #tpu.memory_space<vmem>>, %arg6: memref<128x128xf32, #tpu.memory_space<vmem>>, %arg7: memref<1x8x128xf32, #tpu.memory_space<vmem>>, %arg8: memref<8x128xf32, #tpu.memory_space<vmem>>) attributes {dimension_semantics = [#tpu.dimension_semantics<parallel>, #tpu.dimension_semantics<arbitrary>], iteration_bounds = array<i64: 1, 1>, scalar_prefetch = 0 : i64, scratch_operands = 1 : i64, tpu.core_type = #tpu.core_type<tc>, window_params = [{pipeline_mode = #tpu.pipeline_mode<synchronous>, transform_indices = @transform_0, window_bounds = array<i64: 8, 32>}, {transform_indices = @transform_1, window_bounds = array<i64: 1, 32, 128>}, {transform_indices = @transform_2, window_bounds = array<i64: 1, 128>}, {transform_indices = @transform_3, window_bounds = array<i64: 1, 128>}, {transform_indices = @transform_4, window_bounds = array<i64: 128, 128>}, {transform_indices = @transform_5, window_bounds = array<i64: 1, 8, 128>}]} {
    %c0_i32 = arith.constant 0 : i32
    %0 = arith.cmpi eq, %arg1, %c0_i32 : i32
    %1 = arith.extui %0 : i1 to i32
    %c0_i32_0 = arith.constant 0 : i32
    %2 = arith.cmpi ne, %1, %c0_i32_0 : i32
    scf.if %2 {
      %cst_25 = arith.constant 0.000000e+00 : f32
      %42 = vector.broadcast %cst_25 : f32 to vector<8x128xf32>
      %c0_26 = arith.constant 0 : index
      %c0_27 = arith.constant 0 : index
      %43 = vector.load %arg8[%c0_26, %c0_27] : memref<8x128xf32, #tpu.memory_space<vmem>>, vector<8x128xf32>
      tpu.vector_store %arg8[%c0_26, %c0_27], %42 {strides = array<i32>} : memref<8x128xf32, #tpu.memory_space<vmem>>, vector<8x128xf32>,
    } else {
    }
    %c0 = arith.constant 0 : index
    %c0_1 = arith.constant 0 : index
    %3 = vector.load %arg2[%c0, %c0_1] : memref<8x32xf32, #tpu.memory_space<vmem>>, vector<8x32xf32>
    %c0_2 = arith.constant 0 : index
    %c0_3 = arith.constant 0 : index
    %c0_4 = arith.constant 0 : index
    %4 = vector.load %arg3[%c0_2, %c0_3, %c0_4] : memref<1x32x128xf32, #tpu.memory_space<vmem>>, vector<1x32x128xf32>
    %5 = vector.shape_cast %4 : vector<1x32x128xf32> to vector<32x128xf32>
    %cst = arith.constant dense<0.000000e+00> : vector<8x128xf32>
    %6 = tpu.matmul %3, %5, %cst {dimension_numbers = #tpu.dot_dimension_numbers<[1], [0], [0], [1], [0, 0, 1, 1], [], []>} : vector<8x32xf32>, vector<32x128xf32>, vector<8x128xf32> -> vector<8x128xf32>
    %cst_5 = arith.constant dense<0.000000e+00> : vector<128xf32>
    %7 = vector.multi_reduction <add>, %6, %cst_5 [0] : vector<8x128xf32> to vector<128xf32>
    %8 = vector.shape_cast %7 : vector<128xf32> to vector<1x128xf32>
    %cst_6 = arith.constant 1.250000e-01 : f32
    %9 = vector.broadcast %cst_6 : f32 to vector<1x128xf32>
    %10 = arith.mulf %8, %9 : vector<1x128xf32>
    %11 = arith.mulf %6, %6 : vector<8x128xf32>
    %cst_7 = arith.constant dense<0.000000e+00> : vector<128xf32>
    %12 = vector.multi_reduction <add>, %11, %cst_7 [0] : vector<8x128xf32> to vector<128xf32>
    %13 = vector.shape_cast %12 : vector<128xf32> to vector<1x128xf32>
    %cst_8 = arith.constant 1.250000e-01 : f32
    %14 = vector.broadcast %cst_8 : f32 to vector<1x128xf32>
    %15 = arith.mulf %13, %14 : vector<1x128xf32>
    %16 = arith.mulf %10, %10 : vector<1x128xf32>
    %17 = arith.subf %15, %16 : vector<1x128xf32>
    %cst_9 = arith.constant 0.000000e+00 : f32
    %18 = vector.broadcast %cst_9 : f32 to vector<1x128xf32>
    %19 = arith.maximumf %17, %18 : vector<1x128xf32>
    %c0_10 = arith.constant 0 : index
    %c0_11 = arith.constant 0 : index
    %20 = vector.load %arg4[%c0_10, %c0_11] : memref<1x128xf32, #tpu.memory_space<vmem>>, vector<1x128xf32>
    %cst_12 = arith.constant 9.99999974E-6 : f32
    %21 = vector.broadcast %cst_12 : f32 to vector<1x128xf32>
    %22 = arith.addf %19, %21 : vector<1x128xf32>
    %23 = math.rsqrt %22 : vector<1x128xf32>
    %24 = arith.mulf %20, %23 : vector<1x128xf32>
    %c0_13 = arith.constant 0 : index
    %c0_14 = arith.constant 0 : index
    %25 = vector.load %arg5[%c0_13, %c0_14] : memref<1x128xf32, #tpu.memory_space<vmem>>, vector<1x128xf32>
    %26 = arith.mulf %10, %24 : vector<1x128xf32>
    %27 = arith.subf %25, %26 : vector<1x128xf32>
    %28 = vector.broadcast %24 : vector<1x128xf32> to vector<8x128xf32>
    %29 = arith.mulf %6, %28 : vector<8x128xf32>
    %30 = vector.broadcast %27 : vector<1x128xf32> to vector<8x128xf32>
    %31 = arith.addf %29, %30 : vector<8x128xf32>
    %cst_15 = arith.constant 0.000000e+00 : f32
    %32 = vector.broadcast %cst_15 : f32 to vector<8x128xf32>
    %33 = arith.maximumf %31, %32 : vector<8x128xf32>
    %c0_16 = arith.constant 0 : index
    %c0_17 = arith.constant 0 : index
    %34 = vector.load %arg8[%c0_16, %c0_17] : memref<8x128xf32, #tpu.memory_space<vmem>>, vector<8x128xf32>
    %c0_18 = arith.constant 0 : index
    %c0_19 = arith.constant 0 : index
    %35 = vector.load %arg6[%c0_18, %c0_19] : memref<128x128xf32, #tpu.memory_space<vmem>>, vector<128x128xf32>
    %cst_20 = arith.constant dense<0.000000e+00> : vector<8x128xf32>
    %36 = tpu.matmul %33, %35, %cst_20 {dimension_numbers = #tpu.dot_dimension_numbers<[1], [0], [0], [1], [0, 0, 1, 1], [], []>} : vector<8x128xf32>, vector<128x128xf32>, vector<8x128xf32> -> vector<8x128xf32>
    %37 = arith.addf %34, %36 : vector<8x128xf32>
    %c0_21 = arith.constant 0 : index
    %c0_22 = arith.constant 0 : index
    %38 = vector.load %arg8[%c0_21, %c0_22] : memref<8x128xf32, #tpu.memory_space<vmem>>, vector<8x128xf32>
    tpu.vector_store %arg8[%c0_21, %c0_22], %37 {strides = array<i32>} : memref<8x128xf32, #tpu.memory_space<vmem>>, vector<8x128xf32>,
    %c0_i32_23 = arith.constant 0 : i32
    %39 = arith.cmpi eq, %arg1, %c0_i32_23 : i32
    %40 = arith.extui %39 : i1 to i32
    %c0_i32_24 = arith.constant 0 : i32
    %41 = arith.cmpi ne, %40, %c0_i32_24 : i32
    scf.if %41 {
      %c0_25 = arith.constant 0 : index
      %c0_26 = arith.constant 0 : index
      %42 = vector.load %arg8[%c0_25, %c0_26] : memref<8x128xf32, #tpu.memory_space<vmem>>, vector<8x128xf32>
      %c0_27 = arith.constant 0 : index
      %c0_28 = arith.constant 0 : index
      %c0_29 = arith.constant 0 : index
      %43 = vector.load %arg7[%c0_27, %c0_28, %c0_29] : memref<1x8x128xf32, #tpu.memory_space<vmem>>, vector<1x8x128xf32>
      %44 = vector.shape_cast %43 : vector<1x8x128xf32> to vector<8x128xf32>
      %45 = vector.shape_cast %42 : vector<8x128xf32> to vector<1x8x128xf32>
      tpu.vector_store %arg7[%c0_27, %c0_28, %c0_29], %45 {strides = array<i32>} : memref<1x8x128xf32, #tpu.memory_space<vmem>>, vector<1x8x128xf32>,
    } else {
    }
    return
  }
  func.func @transform_0(%arg0: i32, %arg1: i32) -> (i32, i32) {
    %c0_i32 = arith.constant 0 : i32
    %c0_i32_0 = arith.constant 0 : i32
    %c0_i32_1 = arith.constant 0 : i32
    return %c0_i32, %c0_i32_0 : i32, i32
  }
  func.func @transform_1(%arg0: i32, %arg1: i32) -> (i32, i32, i32) {
    %c1_i32 = arith.constant 1 : i32
    %0 = arith.muli %arg0, %c1_i32 : i32
    %1 = arith.addi %0, %arg1 : i32
    %c0_i32 = arith.constant 0 : i32
    %c0_i32_0 = arith.constant 0 : i32
    %c0_i32_1 = arith.constant 0 : i32
    return %1, %c0_i32, %c0_i32_0 : i32, i32, i32
  }
  func.func @transform_2(%arg0: i32, %arg1: i32) -> (i32, i32) {
    %c1_i32 = arith.constant 1 : i32
    %0 = arith.muli %arg0, %c1_i32 : i32
    %1 = arith.addi %0, %arg1 : i32
    %c0_i32 = arith.constant 0 : i32
    %c0_i32_0 = arith.constant 0 : i32
    return %c0_i32, %1 : i32, i32
  }
  func.func @transform_3(%arg0: i32, %arg1: i32) -> (i32, i32) {
    %c1_i32 = arith.constant 1 : i32
    %0 = arith.muli %arg0, %c1_i32 : i32
    %1 = arith.addi %0, %arg1 : i32
    %c0_i32 = arith.constant 0 : i32
    %c0_i32_0 = arith.constant 0 : i32
    return %c0_i32, %1 : i32, i32
  }
  func.func @transform_4(%arg0: i32, %arg1: i32) -> (i32, i32) {
    %c1_i32 = arith.constant 1 : i32
    %0 = arith.muli %arg0, %c1_i32 : i32
    %1 = arith.addi %0, %arg1 : i32
    %c0_i32 = arith.constant 0 : i32
    %c0_i32_0 = arith.constant 0 : i32
    return %1, %c0_i32 : i32, i32
  }
  func.func @transform_5(%arg0: i32, %arg1: i32) -> (i32, i32, i32) {
    %c0_i32 = arith.constant 0 : i32
    %c0_i32_0 = arith.constant 0 : i32
    %c0_i32_1 = arith.constant 0 : i32
    return %arg0, %c0_i32, %c0_i32_0 : i32, i32, i32
  }
}

</mosaic_0001>

<bundles_post_ra>
// kernel: tpu_custom_call.1
= control target key start
LH: loop header
LB: loop body
LE: loop exit
PB: predicated region body
PF: predicated region fallthrough
CT: control target
= control target key end

     0   :  { %10 = vsyncpa [#allocation4], 0  ;;  %s582_s0 = inlined_call_operand.hbm [shape: f32[8,32], index: 0, kind: input, shape index: {}]   ;;  %s583_s1 = inlined_call_operand.hbm [shape: f32[1,32,128], index: 1, kind: input, shape index: {}]   ;;  %s584_s2 = inlined_call_operand.vmem [shape: f32[1,128], index: 2, kind: input, shape index: {}]   ;;  %s585_s3 = inlined_call_operand.vmem [shape: f32[1,128], index: 3, kind: input, shape index: {}]   ;;  %s586_s4 = inlined_call_operand.hbm [shape: f32[128,128], index: 4, kind: input, shape index: {}]   ;;  %s587_s5 = inlined_call_operand.hbm [shape: f32[1,8,128], index: 5, kind: output, shape index: {}]  }
   0x1   :  { %11 = vsyncpa [#allocation7], 0 }
   0x2   :  { %12 = vsyncpa [#allocation5], 0  ;;  %s504_s18 = smov [#allocation6]  }
   0x3   :  { %s32_s19 = sshll.u32 %s504_s18, 4  ;;  %s33_s19 = int_to_ptr.vmem [resolvable:$true] %s32_s19 }
   0x4   :  { %s426_s20 = scalar_lea.vmem %s33_s19, 512  ;;  %p431_p1 = scmp.lt.s32.totalorder %s33_s19, %s33_s19 }
   0x5   :  { %p427_p0 = scmp.ne.s32.totalorder %s33_s19, %s426_s20  ;;  %p432_p2 = scmp.lt.s32.totalorder %s426_s20, %s426_s20 }
   0x7   :  { %p433_p3 = por %p432_p2, %p431_p1 }
   0x9   :  { %p434_p4 = pnand %p433_p3, %p427_p0 }
   0xb   :  { %437 = shalt.err (!%p434_p4)
}
   0xc   :  { %s505_s21 = smov 128   ;;  %s506_s22 = smov 8  }
   0xd   :  { %38 = dma.hbm_to_vmem [thread:$0]  %s583_s1, 512, %s33_s19, [#allocation7], %s505_s21, %s505_s21, %s506_s22  }
   0xe   :  { %s507_s25 = smov [#allocation3]   ;;  %s508_s27 = smov [#allocation8]  }
   0xf   :  { %s19_s26 = sshll.u32 %s507_s25, 4  ;;  %s62_s28 = sshll.u32 %s508_s27, 4  ;;  %s20_s26 = int_to_ptr.vmem [resolvable:$true] %s19_s26  ;;  %s63_s28 = int_to_ptr.vmem [resolvable:$true] %s62_s28 }
  0x10   :  { %s446_s29 = scalar_lea.vmem %s20_s26, 128  ;;  %p451_p6 = scmp.lt.s32.totalorder %s20_s26, %s20_s26 }
  0x11   :  { %p447_p5 = scmp.ne.s32.totalorder %s20_s26, %s446_s29  ;;  %p452_p7 = scmp.lt.s32.totalorder %s446_s29, %s446_s29 }
  0x13   :  { %p453_p8 = por %p452_p7, %p451_p6 }
  0x15   :  { %p454_p9 = pnand %p453_p8, %p447_p5 }
  0x17   :  { %457 = shalt.err (!%p454_p9)
}
  0x18   :  { %22 = dma.hbm_to_vmem [thread:$0]  %s582_s0, 128, %s20_s26, [#allocation4]  }
  0x19   :  { %s466_s7 = scalar_lea.vmem %s63_s28, 2048  ;;  %p471_p11 = scmp.lt.s32.totalorder %s63_s28, %s63_s28 }
  0x1a   :  { %p467_p10 = scmp.ne.s32.totalorder %s63_s28, %s466_s7  ;;  %p472_p12 = scmp.lt.s32.totalorder %s466_s7, %s466_s7 }
  0x1c   :  { %p473_p13 = por %p472_p12, %p471_p11 }
  0x1e   :  { %p474_p0 = pnand %p473_p13, %p467_p10 }
  0x20   :  { %477 = shalt.err (!%p474_p0)
}
  0x21   :  { %68 = dma.hbm_to_vmem [thread:$0]  %s586_s4, 2048, %s63_s28, [#allocation7], %s505_s21, %s505_s21, %s506_s22  }
  0x22   :  { %498 = dma.done.wait [#allocation4], 128  }
  0x23   :  { %499 = vsyncadd [#allocation4], 4294967168 }
  0x24   :  { %500 = dma.done.wait [#allocation7], 2560  }
  0x25   :  { %501 = vsyncadd [#allocation7], 4294964736  ;;  %v509_v0 = vmov 0.0   ;;  %vm510_vm0 = vmmov 0   ;;  %v108_v1 = vld [vmem:[#allocation6 + $0x18] sm:$0xff]  ;;  %v107_v2 = vld [vmem:[#allocation6 + $0x10] sm:$0xff]  ;;  %v209_v43 = vlaneseq }
  0x26   :  { %362 = vmatprep.subr.mxu0 %v509_v0  ;;  %370 = vmatprep.mubr.msk.f32.mxu0 %vm510_vm0, %v509_v0  ;;  %v106_v3 = vld [vmem:[#allocation6 + $0x8] sm:$0xff]  ;;  %v105_v4 = vld [vmem:[#allocation6] sm:$0xff]  ;;  %v104_v5 = vld [vmem:[#allocation3] sm:$0xff]  ;;  %vm109_vm1 = vcmask 261120   ;;  %s511_s11 = smov [#allocation9]  }
  0x27   :  { %373 = vmatprep.subr.mxu1 %v509_v0  ;;  %405 = vmatprep.mubr.msk.f32.mxu1 %vm510_vm0, %v509_v0  ;;  %v239_v6 = vld [vmem:[#allocation8 + $0x78] sm:$0xff]  ;;  %v238_v7 = vld [vmem:[#allocation8 + $0x70] sm:$0xff]  ;;  %v237_v8 = vld [vmem:[#allocation8 + $0x68] sm:$0xff]  ;;  %v210_v44 = vshrl.u32 %v209_v43, 7  ;;  %s323_s12 = sshll.u32 %s511_s11, 4  ;;  %s324_s12 = int_to_ptr.vmem [resolvable:$true] %s323_s12 }
  0x28   :  { %363 = vmatpush3.msra.mxu0 %v108_v1  ;;  %374 = vmatpush3.msra.mxu1 %v239_v6  ;;  %v236_v9 = vld [vmem:[#allocation8 + $0x60] sm:$0xff]  ;;  %v235_v10 = vld [vmem:[#allocation8 + $0x58] sm:$0xff]  ;;  %v234_v11 = vld [vmem:[#allocation8 + $0x50] sm:$0xff]  ;;  %p483_p2 = scmp.lt.s32.totalorder %s324_s12, %s324_s12 }
  0x29   :  { %364 = vmatprep.subr.mxu0 %v509_v0  ;;  %375 = vmatprep.subr.mxu1 %v509_v0  ;;  %v233_v12 = vld [vmem:[#allocation8 + $0x48] sm:$0xff]  ;;  %v232_v13 = vld [vmem:[#allocation8 + $0x40] sm:$0xff]  ;;  %v231_v14 = vld [vmem:[#allocation8 + $0x38] sm:$0xff]  ;;  %v211_v46 = vsub.s32 0, %v210_v44 }
  0x2a   :  { %365 = vmatpush3.msra.mxu0 %v107_v2  ;;  %376 = vmatpush3.msra.mxu1 %v238_v7  ;;  %v230_v15 = vld [vmem:[#allocation8 + $0x30] sm:$0xff]  ;;  %v229_v16 = vld [vmem:[#allocation8 + $0x28] sm:$0xff]  ;;  %v228_v17 = vld [vmem:[#allocation8 + $0x20] sm:$0xff] }
  0x2b   :  { %366 = vmatprep.subr.mxu0 %v509_v0  ;;  %377 = vmatprep.subr.mxu1 %v509_v0  ;;  %v227_v18 = vld [vmem:[#allocation8 + $0x18] sm:$0xff]  ;;  %v226_v19 = vld [vmem:[#allocation8 + $0x10] sm:$0xff]  ;;  %v225_v20 = vld [vmem:[#allocation8 + $0x8] sm:$0xff] }
  0x2c   :  { %367 = vmatpush3.msra.mxu0 %v106_v3  ;;  %378 = vmatpush3.msra.mxu1 %v237_v8  ;;  %v224_v21 = vld [vmem:[#allocation8] sm:$0xff]  ;;  %v201_v45 = vld [vmem:[%s584_s2] sm:$0x1]  ;;  %s478_s2 = scalar_lea.vmem %s324_s12, 128 }
  0x2d   :  { %368 = vmatprep.subr.mxu0 %v509_v0  ;;  %379 = vmatprep.subr.mxu1 %v509_v0  ;;  %v205_v49 = vld [vmem:[%s585_s3] sm:$0x1]  ;;  %p479_p1 = scmp.ne.s32.totalorder %s324_s12, %s478_s2  ;;  %p484_p3 = scmp.lt.s32.totalorder %s478_s2, %s478_s2 }
  0x2e   :  { %369 = vmatpush3.msra.mxu0 %v105_v4  ;;  %380 = vmatpush3.msra.mxu1 %v236_v9 }
  0x2f   :  { %371 = vmatmul.mubr.msk.f32.vlgmr.msra.gmra.mxu0 %vm109_vm1, %v104_v5  ;;  %381 = vmatprep.subr.mxu1 %v509_v0  ;;  %p485_p4 = por %p484_p3, %p483_p2 }
  0x30   :  { %382 = vmatpush3.msra.mxu1 %v235_v10 }
  0x31   :  { %383 = vmatprep.subr.mxu1 %v509_v0  ;;  %p486_p5 = pnand %p485_p4, %p479_p1 }
  0x32   :  { %384 = vmatpush3.msra.mxu1 %v234_v11 }
  0x33   :  { %385 = vmatprep.subr.mxu1 %v509_v0 }
  0x34   :  { %386 = vmatpush3.msra.mxu1 %v233_v12 }
  0x35   :  { %387 = vmatprep.subr.mxu1 %v509_v0 }
  0x36   :  { %388 = vmatpush3.msra.mxu1 %v232_v13 }
  0x37   :  { %389 = vmatprep.subr.mxu1 %v509_v0 }
  0x38   :  { %390 = vmatpush3.msra.mxu1 %v231_v14 }
  0x39   :  { %391 = vmatprep.subr.mxu1 %v509_v0 }
  0x3a   :  { %392 = vmatpush3.msra.mxu1 %v230_v15 }
  0x3b   :  { %393 = vmatprep.subr.mxu1 %v509_v0 }
  0x3c   :  { %394 = vmatpush3.msra.mxu1 %v229_v16 }
  0x3d   :  { %395 = vmatprep.subr.mxu1 %v509_v0 }
  0x3e   :  { %396 = vmatpush3.msra.mxu1 %v228_v17 }
  0x3f   :  { %397 = vmatprep.subr.mxu1 %v509_v0 }
  0x40   :  { %398 = vmatpush3.msra.mxu1 %v227_v18 }
  0x41   :  { %399 = vmatprep.subr.mxu1 %v509_v0 }
  0x42   :  { %400 = vmatpush3.msra.mxu1 %v226_v19 }
  0x43   :  { %401 = vmatprep.subr.mxu1 %v509_v0 }
  0x44   :  { %402 = vmatpush3.msra.mxu1 %v225_v20 }
  0x45   :  { %403 = vmatprep.subr.mxu1 %v509_v0 }
  0x46   :  { %404 = vmatpush3.msra.mxu1 %v224_v21 }
  0xef   :  { %v179_v22 = vpop.f32.mrf.mxu0 }
  0xf0   :  { %v183_v23 = vrot.slane %v179_v22, 4  ;;  %v190_v24 = vmul.f32 %v179_v22, %v179_v22 }
  0xf1   :  { %v372_v25 = vpop.f32.mrf.mxu0 }
  0xf2   :  { %v184_v26 = vadd.f32 %v183_v23, %v179_v22  ;;  %v191_v27 = vrot.slane %v190_v24, 4 }
  0xf4   :  { %v185_v28 = vrot.slane %v184_v26, 2  ;;  %v192_v29 = vadd.f32 %v191_v27, %v190_v24 }
  0xf6   :  { %v186_v30 = vadd.f32 %v185_v28, %v184_v26  ;;  %v193_v31 = vrot.slane %v192_v29, 2 }
  0xf8   :  { %v187_v32 = vrot.slane %v186_v30, 1  ;;  %v194_v33 = vadd.f32 %v193_v31, %v192_v29 }
  0xfa   :  { %v188_v34 = vadd.f32 %v187_v32, %v186_v30  ;;  %v195_v35 = vrot.slane %v194_v33, 1 }
  0xfc   :  { %v189_v36 = vmul.f32 0.125, %v188_v34  ;;  %v196_v37 = vadd.f32 %v195_v35, %v194_v33 }
  0xfe   :  { %v197_v38 = vmul.f32 0.125, %v196_v37  ;;  %v198_v39 = vmul.f32 %v189_v36, %v189_v36 }
 0x100   :  { %v199_v40 = vsub.f32 %v197_v38, %v198_v39 }
 0x102   :  { %v200_v41 = vmax.f32 %v199_v40, 0.0 }
 0x104   :  { %v202_v42 = vadd.f32 1e-05, %v200_v41 }
 0x106   :  { %416 = vrsqrt.f32 %v202_v42 }
 0x113   :  { %v417_v47 = vpop.eup %416 }
 0x114   :  { %v204_v48 = vmul.f32 %v417_v47, %v201_v45 }
 0x116   :  { %v212_v50 = vrot.slane %v204_v48, %v211_v46  ;;  %v206_v51 = vmul.f32 %v204_v48, %v189_v36 }
 0x118   :  { %v207_v52 = vsub.f32 %v205_v49, %v206_v51  ;;  %v214_v53 = vmul.f32 %v212_v50, %v179_v22 }
 0x11a   :  { %v219_v54 = vrot.slane %v207_v52, %v211_v46 }
 0x11c   :  { %v221_v55 = vadd.f32 %v219_v54, %v214_v53 }
 0x11e   :  { %v222_v56 = vmax.f32 %v221_v55, 0.0 }
 0x120   :  { %406 = vmatmul.mubr.f32.vlgmr.msra.gmra.mxu1 %v222_v56 }
 0x1e0   :  { %v306_v57 = vpop.f32.mrf.mxu1 }
 0x1e1   :  { %316 = vst [vmem:[#allocation9] sm:$0xff] %v306_v57 }
 0x1e2   :  { %v407_v58 = vpop.f32.mrf.mxu1 }
 0x1e3   :  { %489 = shalt.err (!%p486_p5)
}
 0x1e4   :  { %326 = dma.vmem_to_hbm [thread:$0]  %s324_s12, 128, %s587_s5, [#allocation5]  }
 0x1e5   :  { %502 = dma.done.wait [#allocation5], 128  }
 0x1e6   :  { %503 = vsyncadd [#allocation5], 4294967168 }
 0x1e7   :  { %330 = vsyncpa [#allocation4], 1 }
 0x1e8   :  { %331 = vsyncpa [#allocation7], 1 }
 0x1e9   :  { %332 = vsyncpa [#allocation5], 1 }

// kernel: tpu_custom_call.1
= control target key start
LH: loop header
LB: loop body
LE: loop exit
PB: predicated region body
PF: predicated region fallthrough
CT: control target
= control target key end

     0   :  { %10 = vsyncpa [#allocation4], 0  ;;  %s582_s0 = inlined_call_operand.hbm [shape: f32[8,32], index: 0, kind: input, shape index: {}]   ;;  %s583_s1 = inlined_call_operand.hbm [shape: f32[1,32,128], index: 1, kind: input, shape index: {}]   ;;  %s584_s2 = inlined_call_operand.vmem [shape: f32[1,128], index: 2, kind: input, shape index: {}]   ;;  %s585_s3 = inlined_call_operand.vmem [shape: f32[1,128], index: 3, kind: input, shape index: {}]   ;;  %s586_s4 = inlined_call_operand.hbm [shape: f32[128,128], index: 4, kind: input, shape index: {}]   ;;  %s587_s5 = inlined_call_operand.hbm [shape: f32[1,8,128], index: 5, kind: output, shape index: {}]  }
   0x1   :  { %11 = vsyncpa [#allocation7], 0 }
   0x2   :  { %12 = vsyncpa [#allocation5], 0  ;;  %s504_s18 = smov [#allocation6]  }
   0x3   :  { %s32_s19 = sshll.u32 %s504_s18, 4  ;;  %s33_s19 = int_to_ptr.vmem [resolvable:$true] %s32_s19 }
   0x4   :  { %s426_s20 = scalar_lea.vmem %s33_s19, 512  ;;  %p431_p1 = scmp.lt.s32.totalorder %s33_s19, %s33_s19 }
   0x5   :  { %p427_p0 = scmp.ne.s32.totalorder %s33_s19, %s426_s20  ;;  %p432_p2 = scmp.lt.s32.totalorder %s426_s20, %s426_s20 }
   0x7   :  { %p433_p3 = por %p432_p2, %p431_p1 }
   0x9   :  { %p434_p4 = pnand %p433_p3, %p427_p0 }
   0xb   :  { %437 = shalt.err (!%p434_p4)
}
   0xc   :  { %s505_s21 = smov 128   ;;  %s506_s22 = smov 8  }
   0xd   :  { %38 = dma.hbm_to_vmem [thread:$0]  %s583_s1, 512, %s33_s19, [#allocation7], %s505_s21, %s505_s21, %s506_s22  }
   0xe   :  { %s507_s25 = smov [#allocation3]   ;;  %s508_s27 = smov [#allocation8]  }
   0xf   :  { %s19_s26 = sshll.u32 %s507_s25, 4  ;;  %s62_s28 = sshll.u32 %s508_s27, 4  ;;  %s20_s26 = int_to_ptr.vmem [resolvable:$true] %s19_s26  ;;  %s63_s28 = int_to_ptr.vmem [resolvable:$true] %s62_s28 }
  0x10   :  { %s446_s29 = scalar_lea.vmem %s20_s26, 128  ;;  %p451_p6 = scmp.lt.s32.totalorder %s20_s26, %s20_s26 }
  0x11   :  { %p447_p5 = scmp.ne.s32.totalorder %s20_s26, %s446_s29  ;;  %p452_p7 = scmp.lt.s32.totalorder %s446_s29, %s446_s29 }
  0x13   :  { %p453_p8 = por %p452_p7, %p451_p6 }
  0x15   :  { %p454_p9 = pnand %p453_p8, %p447_p5 }
  0x17   :  { %457 = shalt.err (!%p454_p9)
}
  0x18   :  { %22 = dma.hbm_to_vmem [thread:$0]  %s582_s0, 128, %s20_s26, [#allocation4]  }
  0x19   :  { %s466_s7 = scalar_lea.vmem %s63_s28, 2048  ;;  %p471_p11 = scmp.lt.s32.totalorder %s63_s28, %s63_s28 }
  0x1a   :  { %p467_p10 = scmp.ne.s32.totalorder %s63_s28, %s466_s7  ;;  %p472_p12 = scmp.lt.s32.totalorder %s466_s7, %s466_s7 }
  0x1c   :  { %p473_p13 = por %p472_p12, %p471_p11 }
  0x1e   :  { %p474_p0 = pnand %p473_p13, %p467_p10 }
  0x20   :  { %477 = shalt.err (!%p474_p0)
}
  0x21   :  { %68 = dma.hbm_to_vmem [thread:$0]  %s586_s4, 2048, %s63_s28, [#allocation7], %s505_s21, %s505_s21, %s506_s22  }
  0x22   :  { %498 = dma.done.wait [#allocation4], 128  }
  0x23   :  { %499 = vsyncadd [#allocation4], 4294967168 }
  0x24   :  { %500 = dma.done.wait [#allocation7], 2560  }
  0x25   :  { %501 = vsyncadd [#allocation7], 4294964736  ;;  %v509_v0 = vmov 0.0   ;;  %vm510_vm0 = vmmov 0   ;;  %v108_v1 = vld [vmem:[#allocation6 + $0x18] sm:$0xff]  ;;  %v107_v2 = vld [vmem:[#allocation6 + $0x10] sm:$0xff]  ;;  %v209_v43 = vlaneseq }
  0x26   :  { %362 = vmatprep.subr.mxu0 %v509_v0  ;;  %370 = vmatprep.mubr.msk.f32.mxu0 %vm510_vm0, %v509_v0  ;;  %v106_v3 = vld [vmem:[#allocation6 + $0x8] sm:$0xff]  ;;  %v105_v4 = vld [vmem:[#allocation6] sm:$0xff]  ;;  %v104_v5 = vld [vmem:[#allocation3] sm:$0xff]  ;;  %vm109_vm1 = vcmask 261120   ;;  %s511_s11 = smov [#allocation9]  }
  0x27   :  { %373 = vmatprep.subr.mxu1 %v509_v0  ;;  %405 = vmatprep.mubr.msk.f32.mxu1 %vm510_vm0, %v509_v0  ;;  %v239_v6 = vld [vmem:[#allocation8 + $0x78] sm:$0xff]  ;;  %v238_v7 = vld [vmem:[#allocation8 + $0x70] sm:$0xff]  ;;  %v237_v8 = vld [vmem:[#allocation8 + $0x68] sm:$0xff]  ;;  %v210_v44 = vshrl.u32 %v209_v43, 7  ;;  %s323_s12 = sshll.u32 %s511_s11, 4  ;;  %s324_s12 = int_to_ptr.vmem [resolvable:$true] %s323_s12 }
  0x28   :  { %363 = vmatpush3.msra.mxu0 %v108_v1  ;;  %374 = vmatpush3.msra.mxu1 %v239_v6  ;;  %v236_v9 = vld [vmem:[#allocation8 + $0x60] sm:$0xff]  ;;  %v235_v10 = vld [vmem:[#allocation8 + $0x58] sm:$0xff]  ;;  %v234_v11 = vld [vmem:[#allocation8 + $0x50] sm:$0xff]  ;;  %p483_p2 = scmp.lt.s32.totalorder %s324_s12, %s324_s12 }
  0x29   :  { %364 = vmatprep.subr.mxu0 %v509_v0  ;;  %375 = vmatprep.subr.mxu1 %v509_v0  ;;  %v233_v12 = vld [vmem:[#allocation8 + $0x48] sm:$0xff]  ;;  %v232_v13 = vld [vmem:[#allocation8 + $0x40] sm:$0xff]  ;;  %v231_v14 = vld [vmem:[#allocation8 + $0x38] sm:$0xff]  ;;  %v211_v46 = vsub.s32 0, %v210_v44 }
  0x2a   :  { %365 = vmatpush3.msra.mxu0 %v107_v2  ;;  %376 = vmatpush3.msra.mxu1 %v238_v7  ;;  %v230_v15 = vld [vmem:[#allocation8 + $0x30] sm:$0xff]  ;;  %v229_v16 = vld [vmem:[#allocation8 + $0x28] sm:$0xff]  ;;  %v228_v17 = vld [vmem:[#allocation8 + $0x20] sm:$0xff] }
  0x2b   :  { %366 = vmatprep.subr.mxu0 %v509_v0  ;;  %377 = vmatprep.subr.mxu1 %v509_v0  ;;  %v227_v18 = vld [vmem:[#allocation8 + $0x18] sm:$0xff]  ;;  %v226_v19 = vld [vmem:[#allocation8 + $0x10] sm:$0xff]  ;;  %v225_v20 = vld [vmem:[#allocation8 + $0x8] sm:$0xff] }
  0x2c   :  { %367 = vmatpush3.msra.mxu0 %v106_v3  ;;  %378 = vmatpush3.msra.mxu1 %v237_v8  ;;  %v224_v21 = vld [vmem:[#allocation8] sm:$0xff]  ;;  %v201_v45 = vld [vmem:[%s584_s2] sm:$0x1]  ;;  %s478_s2 = scalar_lea.vmem %s324_s12, 128 }
  0x2d   :  { %368 = vmatprep.subr.mxu0 %v509_v0  ;;  %379 = vmatprep.subr.mxu1 %v509_v0  ;;  %v205_v49 = vld [vmem:[%s585_s3] sm:$0x1]  ;;  %p479_p1 = scmp.ne.s32.totalorder %s324_s12, %s478_s2  ;;  %p484_p3 = scmp.lt.s32.totalorder %s478_s2, %s478_s2 }
  0x2e   :  { %369 = vmatpush3.msra.mxu0 %v105_v4  ;;  %380 = vmatpush3.msra.mxu1 %v236_v9 }
  0x2f   :  { %371 = vmatmul.mubr.msk.f32.vlgmr.msra.gmra.mxu0 %vm109_vm1, %v104_v5  ;;  %381 = vmatprep.subr.mxu1 %v509_v0  ;;  %p485_p4 = por %p484_p3, %p483_p2 }
  0x30   :  { %382 = vmatpush3.msra.mxu1 %v235_v10 }
  0x31   :  { %383 = vmatprep.subr.mxu1 %v509_v0  ;;  %p486_p5 = pnand %p485_p4, %p479_p1 }
  0x32   :  { %384 = vmatpush3.msra.mxu1 %v234_v11 }
  0x33   :  { %385 = vmatprep.subr.mxu1 %v509_v0 }
  0x34   :  { %386 = vmatpush3.msra.mxu1 %v233_v12 }
  0x35   :  { %387 = vmatprep.subr.mxu1 %v509_v0 }
  0x36   :  { %388 = vmatpush3.msra.mxu1 %v232_v13 }
  0x37   :  { %389 = vmatprep.subr.mxu1 %v509_v0 }
  0x38   :  { %390 = vmatpush3.msra.mxu1 %v231_v14 }
  0x39   :  { %391 = vmatprep.subr.mxu1 %v509_v0 }
  0x3a   :  { %392 = vmatpush3.msra.mxu1 %v230_v15 }
  0x3b   :  { %393 = vmatprep.subr.mxu1 %v509_v0 }
  0x3c   :  { %394 = vmatpush3.msra.mxu1 %v229_v16 }
  0x3d   :  { %395 = vmatprep.subr.mxu1 %v509_v0 }
  0x3e   :  { %396 = vmatpush3.msra.mxu1 %v228_v17 }
  0x3f   :  { %397 = vmatprep.subr.mxu1 %v509_v0 }
  0x40   :  { %398 = vmatpush3.msra.mxu1 %v227_v18 }
  0x41   :  { %399 = vmatprep.subr.mxu1 %v509_v0 }
  0x42   :  { %400 = vmatpush3.msra.mxu1 %v226_v19 }
  0x43   :  { %401 = vmatprep.subr.mxu1 %v509_v0 }
  0x44   :  { %402 = vmatpush3.msra.mxu1 %v225_v20 }
  0x45   :  { %403 = vmatprep.subr.mxu1 %v509_v0 }
  0x46   :  { %404 = vmatpush3.msra.mxu1 %v224_v21 }
  0xef   :  { %v179_v22 = vpop.f32.mrf.mxu0 }
  0xf0   :  { %v183_v23 = vrot.slane %v179_v22, 4  ;;  %v190_v24 = vmul.f32 %v179_v22, %v179_v22 }
  0xf1   :  { %v372_v25 = vpop.f32.mrf.mxu0 }
  0xf2   :  { %v184_v26 = vadd.f32 %v183_v23, %v179_v22  ;;  %v191_v27 = vrot.slane %v190_v24, 4 }
  0xf4   :  { %v185_v28 = vrot.slane %v184_v26, 2  ;;  %v192_v29 = vadd.f32 %v191_v27, %v190_v24 }
  0xf6   :  { %v186_v30 = vadd.f32 %v185_v28, %v184_v26  ;;  %v193_v31 = vrot.slane %v192_v29, 2 }
  0xf8   :  { %v187_v32 = vrot.slane %v186_v30, 1  ;;  %v194_v33 = vadd.f32 %v193_v31, %v192_v29 }
  0xfa   :  { %v188_v34 = vadd.f32 %v187_v32, %v186_v30  ;;  %v195_v35 = vrot.slane %v194_v33, 1 }
  0xfc   :  { %v189_v36 = vmul.f32 0.125, %v188_v34  ;;  %v196_v37 = vadd.f32 %v195_v35, %v194_v33 }
  0xfe   :  { %v197_v38 = vmul.f32 0.125, %v196_v37  ;;  %v198_v39 = vmul.f32 %v189_v36, %v189_v36 }
 0x100   :  { %v199_v40 = vsub.f32 %v197_v38, %v198_v39 }
 0x102   :  { %v200_v41 = vmax.f32 %v199_v40, 0.0 }
 0x104   :  { %v202_v42 = vadd.f32 1e-05, %v200_v41 }
 0x106   :  { %416 = vrsqrt.f32 %v202_v42 }
 0x113   :  { %v417_v47 = vpop.eup %416 }
 0x114   :  { %v204_v48 = vmul.f32 %v417_v47, %v201_v45 }
 0x116   :  { %v212_v50 = vrot.slane %v204_v48, %v211_v46  ;;  %v206_v51 = vmul.f32 %v204_v48, %v189_v36 }
 0x118   :  { %v207_v52 = vsub.f32 %v205_v49, %v206_v51  ;;  %v214_v53 = vmul.f32 %v212_v50, %v179_v22 }
 0x11a   :  { %v219_v54 = vrot.slane %v207_v52, %v211_v46 }
 0x11c   :  { %v221_v55 = vadd.f32 %v219_v54, %v214_v53 }
 0x11e   :  { %v222_v56 = vmax.f32 %v221_v55, 0.0 }
 0x120   :  { %406 = vmatmul.mubr.f32.vlgmr.msra.gmra.mxu1 %v222_v56 }
 0x1e0   :  { %v306_v57 = vpop.f32.mrf.mxu1 }
 0x1e1   :  { %316 = vst [vmem:[#allocation9] sm:$0xff] %v306_v57 }
 0x1e2   :  { %v407_v58 = vpop.f32.mrf.mxu1 }
 0x1e3   :  { %489 = shalt.err (!%p486_p5)
}
 0x1e4   :  { %326 = dma.vmem_to_hbm [thread:$0]  %s324_s12, 128, %s587_s5, [#allocation5]  }
 0x1e5   :  { %502 = dma.done.wait [#allocation5], 128  }
 0x1e6   :  { %503 = vsyncadd [#allocation5], 4294967168 }
 0x1e7   :  { %330 = vsyncpa [#allocation4], 1 }
 0x1e8   :  { %331 = vsyncpa [#allocation7], 1 }
 0x1e9   :  { %332 = vsyncpa [#allocation5], 1 }

</bundles_post_ra>
